<compile_context>
chip_gen: v7x
topology: tpu7x:2x2x1
jax: 0.10.0
libtpu: 0.0.40
codegen_flags: <defaults>
</compile_context>

<pallas_src>
import functools

import jax
import jax.numpy as jnp
import numpy as np
from jax.experimental import pallas as pl
from jax.experimental.pallas import tpu as pltpu


def _round_up(x, m):
    return ((x + m - 1) // m) * m


def _distance_map_kernel(tid_ref, first_ref, offset_ref, src_ref, dist_ref,
                         out_ref, *, coeff, n_tile):
    # tid_ref/first_ref : SMEM (num_blocks,) int32   -- scalar prefetch
    # offset_ref        : (G_pad, 1) f32             -- Gaussian centers
    # src_ref           : (1, E_tile) int32          -- global src id, lane-dense
    # dist_ref          : (1, E_tile) f32            -- per-edge distance, lane-dense
    # out_ref           : (G_pad, N_tile) f32        -- resident accumulator
    b = pl.program_id(0)
    e_tile = dist_ref.shape[1]

    # New node tile starts here -> zero its accumulator.
    @pl.when(first_ref[b] == 1)
    def _():
        out_ref[...] = jnp.zeros_like(out_ref)

    # Gaussian smearing built directly as (G_pad, E_tile): dist stays lane-dense,
    # offsets broadcast along sublanes.  Pure VPU/EUP work, no relayout.
    d = dist_ref[...] - offset_ref[...]                  # (G_pad, E_tile)
    gauss = jnp.exp(coeff * (d * d))

    # One-hot scatter matrix built as (N_tile, E_tile): node ids via sublane
    # iota, src ids stay on the lane axis (no transpose / relayout).
    local_src = src_ref[...] - tid_ref[b] * n_tile       # (1, E_tile)
    node_ids = jax.lax.broadcasted_iota(jnp.int32, (n_tile, e_tile), 0)
    onehot = (node_ids == local_src).astype(jnp.float32)  # (N_tile, E_tile)

    # Scatter-add on the MXU: contract the E axis of both operands (A @ B^T).
    out_ref[...] += jax.lax.dot_general(
        gauss, onehot,
        dimension_numbers=(((1,), (1,)), ((), ())),
        preferred_element_type=jnp.float32)


def distance_map(pos, edge_index, *, cutoff=10.0, num_gaussians=50,
                 n_tile=256, e_tile=512):
    """JAX/Pallas equivalent of Distance_map.forward(pos, edge_index)."""
    assert n_tile % 128 == 0 and e_tile % 128 == 0
    assert num_gaussians >= 2, "GaussianSmearing requires num_gaussians >= 2"

    pos = pos.astype(jnp.float32)
    n_nodes = pos.shape[0]
    n_edges = edge_index.shape[1]
    assert n_nodes >= 1, "need at least one node"
    g = num_gaussians

    # GaussianSmearing parameters (deterministic, from __init__).
    offset_np = np.linspace(0.0, cutoff, g, dtype=np.float32)
    coeff = -0.5 / float(offset_np[1] - offset_np[0]) ** 2
    g_pad = _round_up(g, 8)                       # sublane multiple is enough
    offset_col = np.zeros((g_pad, 1), np.float32)
    offset_col[:g, 0] = offset_np                 # padded rows sliced off later
    offset_col = jnp.asarray(offset_col)

    n_pad = _round_up(n_nodes, n_tile)
    num_node_tiles = n_pad // n_tile
    # Static upper bound on segment-padded block count: ceil(E/e) + T.
    num_blocks = (max(n_edges, 1) + e_tile - 1) // e_tile + num_node_tiles
    e_pad_total = num_blocks * e_tile

    src = edge_index[0].astype(jnp.int32)
    dst = edge_index[1].astype(jnp.int32)

    # Sort edges by src node so each node tile owns a contiguous edge segment.
    order = jnp.argsort(src)
    src_s = src[order]
    dst_s = dst[order]

    # Per-edge distance computed in the wrapper (fused gather+sub+sq+sum+sqrt).
    diff = pos[src_s] - pos[dst_s]
    dist_s = jnp.sqrt(jnp.sum(diff * diff, axis=-1)).astype(jnp.float32)

    # Segment-pad: each node tile's edge segment is rounded up to a whole number
    # of e_tile blocks (>= 1 block so every output tile gets zeroed).
    tile_lo = jnp.arange(num_node_tiles, dtype=jnp.int32) * n_tile
    first = jnp.searchsorted(src_s, tile_lo, side='left').astype(jnp.int32)
    last = jnp.searchsorted(src_s, tile_lo + n_tile, side='left').astype(jnp.int32)
    counts = last - first
    blocks_per_tile = jnp.maximum((counts + e_tile - 1) // e_tile, 1)
    block_ends = jnp.cumsum(blocks_per_tile).astype(jnp.int32)   # exclusive end
    block_off = (block_ends - blocks_per_tile).astype(jnp.int32)  # start block
    total_blocks = block_ends[-1]

    # Destination slot of every (sorted) edge in the segment-padded edge stream.
    tile_of_edge = jnp.clip(src_s // n_tile, 0, num_node_tiles - 1)
    rank_in_tile = jnp.arange(n_edges, dtype=jnp.int32) - first[tile_of_edge]
    dest = block_off[tile_of_edge] * e_tile + rank_in_tile

    # Pad value n_pad never matches any local node id -> contributes nothing.
    dist_p = jnp.zeros((e_pad_total,), jnp.float32).at[dest].set(dist_s)
    src_p = jnp.full((e_pad_total,), n_pad, jnp.int32).at[dest].set(src_s)

    # Per-block metadata (scalar prefetch): owning node tile + segment-start flag.
    blk = jnp.arange(num_blocks, dtype=jnp.int32)
    tile_id = jnp.minimum(
        jnp.searchsorted(block_ends, blk, side='right'),
        num_node_tiles - 1).astype(jnp.int32)
    is_first = ((blk == block_off[tile_id]) &
                (blk < total_blocks)).astype(jnp.int32)

    kernel = functools.partial(_distance_map_kernel, coeff=coeff, n_tile=n_tile)

    grid_spec = pltpu.PrefetchScalarGridSpec(
        num_scalar_prefetch=2,
        grid=(num_blocks,),
        in_specs=[
            pl.BlockSpec((g_pad, 1), lambda b, tid, isf: (0, 0)),
            pl.BlockSpec((1, e_tile), lambda b, tid, isf: (0, b)),
            pl.BlockSpec((1, e_tile), lambda b, tid, isf: (0, b)),
        ],
        out_specs=pl.BlockSpec((g_pad, n_tile), lambda b, tid, isf: (0, tid[b])),
    )

    out_t = pl.pallas_call(
        kernel,
        out_shape=jax.ShapeDtypeStruct((g_pad, n_pad), jnp.float32),
        grid_spec=grid_spec,
        compiler_params=pltpu.CompilerParams(
            dimension_semantics=("arbitrary",)),
    )(tile_id, is_first, offset_col,
      src_p.reshape(1, -1), dist_p.reshape(1, -1))

    # Slice the padding off BEFORE transposing, then hand back (N, G).
    return out_t[:g, :n_nodes].T


def _reference(pos, edge_index, cutoff=10.0, num_gaussians=50):
    """Pure-JAX reference mirroring the PyTorch forward."""
    offset = jnp.asarray(np.linspace(0.0, cutoff, num_gaussians,
                                     dtype=np.float32))
    coeff = -0.5 / float(offset[1] - offset[0]) ** 2
    d = jnp.sqrt(jnp.sum((pos[edge_index[0]] - pos[edge_index[1]]) ** 2, axis=-1))
    gauss = jnp.exp(coeff * (d[:, None] - offset[None, :]) ** 2)     # (E, G)
    out = jnp.zeros((pos.shape[0], num_gaussians), jnp.float32)
    return out.at[edge_index[0]].add(gauss)


if __name__ == "__main__":
    key = jax.random.PRNGKey(0)
    k_pos, k_edge = jax.random.split(key)
    cutoff, num_gaussians = 10.0, 50

    # Case 1: tiny graph -> single node tile, one real edge block + one spare.
    n1, e1 = 8, 16
    pos1 = jax.random.normal(k_pos, (n1, 3), dtype=jnp.float32) * 3.0
    ei1 = jax.random.randint(k_edge, (2, e1), 0, n1, dtype=jnp.int32)
    out1 = jax.block_until_ready(
        distance_map(pos1, ei1, cutoff=cutoff, num_gaussians=num_gaussians))
    ref1 = _reference(pos1, ei1, cutoff, num_gaussians)
    np.testing.assert_allclose(np.asarray(out1), np.asarray(ref1),
                               rtol=1e-4, atol=1e-5)

    # Case 2: exercises the grouped multi-tile path (2 node tiles, ~8 blocks).
    n2, e2 = 200, 1000
    pos2 = jax.random.normal(k_pos, (n2, 3), dtype=jnp.float32) * 3.0
    ei2 = jax.random.randint(k_edge, (2, e2), 0, n2, dtype=jnp.int32)
    out2 = jax.block_until_ready(
        distance_map(pos2, ei2, cutoff=cutoff, num_gaussians=num_gaussians,
                     n_tile=128, e_tile=128))
    ref2 = _reference(pos2, ei2, cutoff, num_gaussians)
    np.testing.assert_allclose(np.asarray(out2), np.asarray(ref2),
                               rtol=1e-4, atol=1e-5)

    print("KERNEL_OK")
</pallas_src>

<mosaic_0001>
module attributes {stable_mosaic.version = 11 : i64} {
  func.func @_distance_map_kernel(%arg0: i32, %arg1: memref<2xi32, #tpu.memory_space<smem>>, %arg2: memref<2xi32, #tpu.memory_space<smem>>, %arg3: memref<56x1xf32, #tpu.memory_space<vmem>>, %arg4: memref<1x512xi32, #tpu.memory_space<vmem>>, %arg5: memref<1x512xf32, #tpu.memory_space<vmem>>, %arg6: memref<56x256xf32, #tpu.memory_space<vmem>>) attributes {dimension_semantics = [#tpu.dimension_semantics<arbitrary>], iteration_bounds = array<i64: 2>, scalar_prefetch = 2 : i64, scratch_operands = 0 : i64, tpu.core_type = #tpu.core_type<tc>, window_params = [{pipeline_mode = #tpu.pipeline_mode<synchronous>, transform_indices = @transform_0, window_bounds = array<i64: 56, 1>}, {transform_indices = @transform_1, window_bounds = array<i64: 1, 512>}, {transform_indices = @transform_2, window_bounds = array<i64: 1, 512>}, {transform_indices = @transform_3, window_bounds = array<i64: 56, 256>}]} {
    %0 = arith.index_cast %arg0 : i32 to index
    %1 = memref.load %arg2[%0] : memref<2xi32, #tpu.memory_space<smem>>
    %c1_i32 = arith.constant 1 : i32
    %2 = arith.cmpi eq, %1, %c1_i32 : i32
    %3 = arith.extui %2 : i1 to i32
    %c0_i32 = arith.constant 0 : i32
    %4 = arith.cmpi ne, %3, %c0_i32 : i32
    scf.if %4 {
      %cst_10 = arith.constant 0.000000e+00 : f32
      %29 = vector.broadcast %cst_10 : f32 to vector<56x256xf32>
      %c0_11 = arith.constant 0 : index
      %c0_12 = arith.constant 0 : index
      %30 = vector.load %arg6[%c0_11, %c0_12] : memref<56x256xf32, #tpu.memory_space<vmem>>, vector<56x256xf32>
      tpu.vector_store %arg6[%c0_11, %c0_12], %29 {strides = array<i32>} : memref<56x256xf32, #tpu.memory_space<vmem>>, vector<56x256xf32>,
    } else {
    }
    %c0 = arith.constant 0 : index
    %c0_0 = arith.constant 0 : index
    %5 = vector.load %arg5[%c0, %c0_0] : memref<1x512xf32, #tpu.memory_space<vmem>>, vector<1x512xf32>
    %c0_1 = arith.constant 0 : index
    %c0_2 = arith.constant 0 : index
    %6 = vector.load %arg3[%c0_1, %c0_2] : memref<56x1xf32, #tpu.memory_space<vmem>>, vector<56x1xf32>
    %7 = vector.broadcast %5 : vector<1x512xf32> to vector<56x512xf32>
    %8 = vector.broadcast %6 : vector<56x1xf32> to vector<56x512xf32>
    %9 = arith.subf %7, %8 : vector<56x512xf32>
    %10 = arith.mulf %9, %9 : vector<56x512xf32>
    %cst = arith.constant -12.0049992 : f32
    %11 = vector.broadcast %cst : f32 to vector<56x512xf32>
    %12 = arith.mulf %11, %10 : vector<56x512xf32>
    %13 = math.exp %12 : vector<56x512xf32>
    %c0_3 = arith.constant 0 : index
    %c0_4 = arith.constant 0 : index
    %14 = vector.load %arg4[%c0_3, %c0_4] : memref<1x512xi32, #tpu.memory_space<vmem>>, vector<1x512xi32>
    %15 = arith.index_cast %arg0 : i32 to index
    %16 = memref.load %arg1[%15] : memref<2xi32, #tpu.memory_space<smem>>
    %c256_i32 = arith.constant 256 : i32
    %17 = arith.muli %16, %c256_i32 : i32
    %18 = vector.broadcast %17 : i32 to vector<1x512xi32>
    %19 = arith.subi %14, %18 : vector<1x512xi32>
    %20 = tpu.iota {dimensions = array<i32: 0>} : vector<256x512xi32>
    %21 = vector.broadcast %19 : vector<1x512xi32> to vector<256x512xi32>
    %22 = arith.cmpi eq, %20, %21 : vector<256x512xi32>
    %23 = arith.extui %22 : vector<256x512xi1> to vector<256x512xi32>
    %24 = arith.sitofp %23 : vector<256x512xi32> to vector<256x512xf32>
    %c0_5 = arith.constant 0 : index
    %c0_6 = arith.constant 0 : index
    %25 = vector.load %arg6[%c0_5, %c0_6] : memref<56x256xf32, #tpu.memory_space<vmem>>, vector<56x256xf32>
    %cst_7 = arith.constant dense<0.000000e+00> : vector<56x256xf32>
    %26 = tpu.matmul %13, %24, %cst_7 {dimension_numbers = #tpu.dot_dimension_numbers<[1], [1], [0], [0], [0, 0, 1, 0], [], []>} : vector<56x512xf32>, vector<256x512xf32>, vector<56x256xf32> -> vector<56x256xf32>
    %27 = arith.addf %25, %26 : vector<56x256xf32>
    %c0_8 = arith.constant 0 : index
    %c0_9 = arith.constant 0 : index
    %28 = vector.load %arg6[%c0_8, %c0_9] : memref<56x256xf32, #tpu.memory_space<vmem>>, vector<56x256xf32>
    tpu.vector_store %arg6[%c0_8, %c0_9], %27 {strides = array<i32>} : memref<56x256xf32, #tpu.memory_space<vmem>>, vector<56x256xf32>,
    return
  }
  func.func @transform_0(%arg0: i32, %arg1: memref<2xi32, #tpu.memory_space<smem>>, %arg2: memref<2xi32, #tpu.memory_space<smem>>) -> (i32, i32) {
    %c0_i32 = arith.constant 0 : i32
    %c0_i32_0 = arith.constant 0 : i32
    %c0_i32_1 = arith.constant 0 : i32
    return %c0_i32, %c0_i32_0 : i32, i32
  }
  func.func @transform_1(%arg0: i32, %arg1: memref<2xi32, #tpu.memory_space<smem>>, %arg2: memref<2xi32, #tpu.memory_space<smem>>) -> (i32, i32) {
    %c0_i32 = arith.constant 0 : i32
    %c0_i32_0 = arith.constant 0 : i32
    return %c0_i32, %arg0 : i32, i32
  }
  func.func @transform_2(%arg0: i32, %arg1: memref<2xi32, #tpu.memory_space<smem>>, %arg2: memref<2xi32, #tpu.memory_space<smem>>) -> (i32, i32) {
    %c0_i32 = arith.constant 0 : i32
    %c0_i32_0 = arith.constant 0 : i32
    return %c0_i32, %arg0 : i32, i32
  }
  func.func @transform_3(%arg0: i32, %arg1: memref<2xi32, #tpu.memory_space<smem>>, %arg2: memref<2xi32, #tpu.memory_space<smem>>) -> (i32, i32) {
    %0 = arith.index_cast %arg0 : i32 to index
    %1 = memref.load %arg1[%0] : memref<2xi32, #tpu.memory_space<smem>>
    %c0_i32 = arith.constant 0 : i32
    %c0_i32_0 = arith.constant 0 : i32
    return %c0_i32, %1 : i32, i32
  }
}

</mosaic_0001>

<bundles_post_ra>
// kernel: tpu_custom_call.1
= control target key start
LH: loop header
LB: loop body
LE: loop exit
PB: predicated region body
PF: predicated region fallthrough
CT: control target
= control target key end

     0   :  { %s3051_s0 = inlined_call_operand.vmem [shape: s32[2], index: 0, kind: input, shape index: {}]   ;;  %s3052_s2 = inlined_call_operand.vmem [shape: f32[56,1], index: 2, kind: input, shape index: {}]   ;;  %s3053_s3 = inlined_call_operand.vmem [shape: s32[1,1024], index: 3, kind: input, shape index: {}]   ;;  %s3054_s4 = inlined_call_operand.vmem [shape: f32[1,1024], index: 4, kind: input, shape index: {}]   ;;  %s3055_s5 = inlined_call_operand.hbm [shape: f32[56,256], index: 5, kind: output, shape index: {}]   ;;  %s3056_s1 = inlined_call_operand.vmem [shape: s32[2], index: 1, kind: input, shape index: {}]  }
   0x1   :  { %s10_s20 = sshll.u32 %s3051_s0, 4  ;;  %s14_s23 = sshll.u32 %s3056_s1, 4  ;;  %s11_s20 = int_to_ptr.vmem [resolvable:$true] %s10_s20  ;;  %s15_s23 = int_to_ptr.vmem [resolvable:$true] %s14_s23 }
   0x2   :  { %s1721_s24 = scalar_lea.vmem %s11_s20, 16  ;;  %p1726_p1 = scmp.lt.s32.totalorder %s11_s20, %s11_s20 }
   0x3   :  { %p1722_p0 = scmp.ne.s32.totalorder %s11_s20, %s1721_s24  ;;  %p1727_p2 = scmp.lt.s32.totalorder %s1721_s24, %s1721_s24 }
   0x5   :  { %p1728_p3 = por %p1727_p2, %p1726_p1 }
   0x7   :  { %p1729_p4 = pnand %p1728_p3, %p1722_p0 }
   0x9   :  { %1732 = shalt.err (!%p1729_p4)  }
   0xa   :  { %s1811_s25 = smov [#allocation3]   ;;  %s1733_s26 = scalar_lea.vmem %s15_s23, 16 }
   0xb   :  { %13 = dma.vmem_to_smem %s11_s20, 16, %s1811_s25, [#allocation2] }
   0xc   :  { %p1734_p5 = scmp.ne.s32.totalorder %s15_s23, %s1733_s26  ;;  %p1738_p6 = scmp.lt.s32.totalorder %s15_s23, %s15_s23 }
   0xd   :  { %p1739_p7 = scmp.lt.s32.totalorder %s1733_s26, %s1733_s26 }
   0xf   :  { %p1740_p8 = por %p1739_p7, %p1738_p6 }
  0x11   :  { %p1741_p9 = pnand %p1740_p8, %p1734_p5 }
  0x13   :  { %1744 = shalt.err (!%p1741_p9)  }
  0x14   :  { %s1812_s0 = smov [#allocation4]  }
  0x15   :  { %17 = dma.vmem_to_smem %s15_s23, 16, %s1812_s0, [#allocation2] }
  0x16   :  { %1789 = dma.done.wait [#allocation2], 32 }
  0x17   :  { %1790 = vsyncadd [#allocation2], 4294967264 }
  0x18   :  { %19 = sfence }
  0x19   :  { %20 = vsyncpa [#allocation6], 0 }
  0x1a   :  { %22 = vsyncpa [#allocation6 + $0x1], 0  ;;  %s1855_s1 = smov 0   ;;  %s1857_s27 = smov 0  }
  0x1b   :  { %s1859_s28 = smov 0   ;;  %s1861_s29 = smov 0  }
  0x1c LB: > { %s1876_s30 = sadd.s32 4294967295, %s1809_s29   ;;  %s1203_s6 = sadd.s32 4294967294, %s1809_s29   ;;  %s1809_s29 = sphi %s1861_s29, %s3264_s29   ;;  %s1805_s28 = sphi %s1859_s28, %s3263_s28   ;;  %s1801_s27 = sphi %s1857_s27, %s3262_s27   ;;  %s1797_s1 = sphi %s1855_s1, %s3261_s1  }
  0x1d   : > { %s1880_s7 = sadd.s32 1, %s1809_s29   ;;  %s105_s8 = sld [smem:[#allocation3 + %s1809_s29]] }
  0x1e   : > { %s106_s9 = sld [smem:[#allocation3 + %s1880_s7]]  ;;  %p120_p10 = scmp.ne.s32.totalorder %s1805_s28, %s1801_s27 }
  0x1f   : > { %p121_p11 = scmp.eq.s32.totalorder %s1876_s30, 1  ;;  %p126_p12 = scmp.ne.s32.totalorder %s1801_s27, %s1797_s1 }
  0x20   : > { %p127_p13 = scmp.eq.s32.totalorder %s1203_s6, 1  ;;  %p1206_p1 = scmp.ge.s32.totalorder %s1809_s29, 1 }
  0x21   : > { %p1889_p0 = por %p121_p11, %p120_p10  ;;  %p164_p3 = scmp.lt.s32.totalorder %s1809_s29, 3 }
  0x22   : > { %p1894_p2 = por %p127_p13, %p126_p12  ;;  %s110_s12 = sadd.s32 1, %s1805_s28 }
  0x23   : > { %p165_p4 = pnand %p1206_p1, %p164_p3 }
  0x24   : > { %s107_s13 = ssub.s32 %s105_s8, %s106_s9  ;;  %s188_s15 = sand.u32 (!%p165_p4), 1, %s1801_s27  }
  0x25   : > { %p108_p5 = scmp.eq.s32.totalorder %s107_s13, 0  ;;  %168 = sbr.rel (%p165_p4) target bundleno = 480 (0x1e0), region = 32 }
  0x26   : > { %s1207_s16 = sshll.u32 (!%p165_p4), %s1876_s30, 2  ;;  %s1614_s17 = smul.u32 (!%p165_p4), 112, %s188_s15 }
  0x27   : > { %s1901_s14 = scalar_select %p108_p5, %s1805_s28, %s110_s12  }
  0x28   : > { %p192_p6 = scmp.lt.s32.totalorder (!%p165_p4), %s1207_s16, 7  ;;  %s203_s18 = sld [smem:[#allocation4 + %s1876_s30]] (!%p165_p4) }
  0x29   : > { %s1918_s25 = scalar_lea.vmem (!%p165_p4), [#allocation5], %s1614_s17 }
  0x2c   : > { %s3266_s16 = smov (!%p192_p6, %s1207_s16), 7 }
  0x2d   : > { %s194_s21 = scalar_lea.vmem %s3053_s3, %s3266_s16  ;;  %s199_s24 = scalar_lea.vmem %s3054_s4, %s3266_s16 }
  0x2e   : > { %p1209_p7 = scmp.ne.s32.totalorder %s203_s18, 1 }
  0x2f   : > { %v1813_v0 = vmov (!%p1209_p7), 0.0  }
  0x30   : > { %207 = sbr.rel (%p1209_p7) target bundleno = 55 (0x37), region = 36  ;;  %208 = vst [vmem:[%s1918_s25] sm:$0xff] (!%p1209_p7), %v1813_v0  ;;  %209 = vst [vmem:[%s1918_s25 + $0x8] sm:$0xff] (!%p1209_p7), %v1813_v0 }
  0x31   : > { %210 = vst [vmem:[%s1918_s25 + $0x10] sm:$0xff] (!%p1209_p7), %v1813_v0  ;;  %211 = vst [vmem:[%s1918_s25 + $0x18] sm:$0xff] (!%p1209_p7), %v1813_v0 }
  0x32   : > { %212 = vst [vmem:[%s1918_s25 + $0x20] sm:$0xff] (!%p1209_p7), %v1813_v0  ;;  %213 = vst [vmem:[%s1918_s25 + $0x28] sm:$0xff] (!%p1209_p7), %v1813_v0 }
  0x33   : > { %214 = vst [vmem:[%s1918_s25 + $0x30] sm:$0xff] (!%p1209_p7), %v1813_v0  ;;  %215 = vst [vmem:[%s1918_s25 + $0x38] sm:$0xff] (!%p1209_p7), %v1813_v0 }
  0x34   : > { %216 = vst [vmem:[%s1918_s25 + $0x40] sm:$0xff] (!%p1209_p7), %v1813_v0  ;;  %217 = vst [vmem:[%s1918_s25 + $0x48] sm:$0xff] (!%p1209_p7), %v1813_v0 }
  0x35   : > { %218 = vst [vmem:[%s1918_s25 + $0x50] sm:$0xff] (!%p1209_p7), %v1813_v0  ;;  %219 = vst [vmem:[%s1918_s25 + $0x58] sm:$0xff] (!%p1209_p7), %v1813_v0 }
  0x36   : > { %220 = vst [vmem:[%s1918_s25 + $0x60] sm:$0xff] (!%p1209_p7), %v1813_v0  ;;  %221 = vst [vmem:[%s1918_s25 + $0x68] sm:$0xff] (!%p1209_p7), %v1813_v0 }
  0x37 PF: > { %v225_v1 = vld [vmem:[%s3052_s2 + $0x10] sm:$0xff]  ;;  %v223_v2 = vld [vmem:[%s3052_s2] sm:$0xff]  ;;  %v231_v3 = vlaneseq  ;;  %s427_s9 = sld [smem:[#allocation3 + %s1876_s30]]  ;;  %v1814_v4 = vmov 0   ;;  %v226_v6 = vld [vmem:[%s3052_s2 + $0x18] sm:$0xff]  ;;  %v3094_v62 = vmov 0 }
  0x38   : > { %1664 = vset.pattern.permute.xlu1 %v1814_v4  ;;  %1663 = vset.pattern.permute.xlu0 %v1814_v4  ;;  %v224_v7 = vld [vmem:[%s3052_s2 + $0x8] sm:$0xff]  ;;  %v426_v8 = vld [vmem:[%s194_s21] sm:$0xf]  ;;  %v229_v23 = vld [vmem:[%s3052_s2 + $0x30] sm:$0xff]  ;;  %v1815_v25 = vmov 1.0|1.0  }
  0x39   : > { %263 = vperm.xlu1 %1664, %v225_v1   ;;  %253 = vperm.xlu0 %1663, %v223_v2   ;;  %v1941_v5 = vshrl.u32 %v231_v3, 7  ;;  %v228_v12 = vld [vmem:[%s3052_s2 + $0x28] sm:$0xff]  ;;  %v227_v13 = vld [vmem:[%s3052_s2 + $0x20] sm:$0xff]  ;;  %v3097_v0 = vmov 0  ;;  %v3099_v3 = vmov 0  ;;  %v3101_v4 = vmov 0 }
  0x3a   : > { %v3153_v30 = vmov 0  ;;  %v3201_v43 = vmov 0  ;;  %v3205_v44 = vmov 0  ;;  %v3209_v45 = vmov 0  ;;  %s1615_s16 = scalar_select %p1889_p0, [#allocation3], [#allocation7] }
  0x3b   : > { %v237_v9 = vsub.s32 1, %v1941_v5  ;;  %v245_v10 = vsub.s32 3, %v1941_v5  ;;  %v233_v11 = vsub.s32 0, %v1941_v5  ;;  %v241_v15 = vsub.s32 2, %v1941_v5  ;;  %s3268_s30 = smov (!%p1889_p0, %s1876_s30), 0  ;;  %s1135_s13 = sshll.u32 %s1918_s25, 4  ;;  %s3004_s13 = int_to_ptr.vmem [resolvable:$true] %s1135_s13 }
  0x3c   : > { %v433_v17 = vadd.s32 8, %v1941_v5  ;;  %v434_v18 = vadd.s32 16, %v1941_v5  ;;  %v435_v22 = vadd.s32 24, %v1941_v5  ;;  %v436_v26 = vadd.s32 32, %v1941_v5  ;;  %s3010_s20 = scalar_lea.sflag [#allocation6], %s188_s15  ;;  %s1816_s23 = smov [#allocation5]  }
  0x3d   : > { %268 = vperm.xlu1 %1664, %v226_v6   ;;  %258 = vperm.xlu0 %1663, %v224_v7   ;;  %s1210_s22 = sshll.u32 %s427_s9, 8  ;;  %v437_v27 = vadd.s32 40, %v1941_v5  ;;  %v2022_v28 = vadd.s32 48, %v1941_v5  ;;  %v2025_v29 = vadd.s32 56, %v1941_v5  ;;  %v2032_v31 = vadd.s32 64, %v1941_v5  ;;  %s1749_s26 = sshll.u32 %s1816_s23, 4  ;;  %s1750_s26 = int_to_ptr.vmem [resolvable:$false] %s1749_s26 }
  0x3e   : > { %v429_v14 = vstv %s1210_s22  ;;  %v2035_v32 = vadd.s32 72, %v1941_v5  ;;  %v2038_v33 = vadd.s32 80, %v1941_v5  ;;  %v2041_v34 = vadd.s32 88, %v1941_v5  ;;  %s1745_s22 = scalar_lea.vmem %s3004_s13, 1792  ;;  %s1751_s0 = scalar_lea.vmem %s1750_s26, 3584 }
  0x3f   : > { %v430_v16 = vsub.s32 %v426_v8, %v429_v14  ;;  %v2045_v35 = vadd.s32 96, %v1941_v5  ;;  %v2048_v36 = vadd.s32 104, %v1941_v5  ;;  %v2051_v37 = vadd.s32 144, %v1941_v5  ;;  %p1746_p8 = scmp.ne.s32.totalorder %s3004_s13, %s1745_s22  ;;  %p1752_p11 = scmp.lt.s32.totalorder %s3004_s13, %s1750_s26 }
  0x40   : > { %v2054_v38 = vadd.s32 152, %v1941_v5  ;;  %v2061_v39 = vadd.s32 160, %v1941_v5  ;;  %v2064_v40 = vadd.s32 168, %v1941_v5  ;;  %v2072_v41 = vadd.s32 176, %v1941_v5  ;;  %p1753_p12 = scmp.lt.s32.totalorder %s1751_s0, %s1745_s22 }
  0x41   : > { %278 = vperm.xlu1 %1664, %v228_v12   ;;  %273 = vperm.xlu0 %1663, %v227_v13   ;;  %v1968_v19 = vrot.slane %v430_v16, %v237_v9  ;;  %v1972_v20 = vrot.slane %v430_v16, %v245_v10  ;;  %v1976_v21 = vrot.slane %v430_v16, %v233_v11  ;;  %v2075_v42 = vadd.s32 184, %v1941_v5  ;;  %p1747_p9 = pnand %p1746_p8, %p1889_p0 }
  0x42   : > { %v1984_v24 = vrot.slane %v430_v16, %v241_v15  ;;  %v2122_v46 = vadd.s32 192, %v1941_v5  ;;  %v2178_v48 = vadd.s32 200, %v1941_v5  ;;  %v2260_v52 = vadd.s32 208, %v1941_v5  ;;  %p1754_p13 = por %p1753_p12, %p1752_p11 }
  0x43   : > { %vm481_vm0 = vcmp.eq.s32.totalorder %v1941_v5, %v1968_v19  ;;  %vm485_vm1 = vcmp.eq.s32.totalorder %v433_v17, %v1968_v19  ;;  %vm483_vm2 = vcmp.eq.s32.totalorder %v1941_v5, %v1972_v20  ;;  %vm487_vm3 = vcmp.eq.s32.totalorder %v433_v17, %v1972_v20  ;;  %p1748_p10 = pneg %p1747_p9 }
  0x44   : > { %vm1472_vm4 = vmpackc.low %vm485_vm1, %vm481_vm0  ;;  %vm480_vm5 = vcmp.eq.s32.totalorder %v1941_v5, %v1976_v21  ;;  %vm484_vm6 = vcmp.eq.s32.totalorder %v433_v17, %v1976_v21  ;;  %vm482_vm7 = vcmp.eq.s32.totalorder %v1941_v5, %v1984_v24  ;;  %vm486_vm8 = vcmp.eq.s32.totalorder %v433_v17, %v1984_v24 }
  0x45   : > { %283 = vperm.xlu0 %1663, %v229_v23   ;;  %1473 = vmatprep.subr.msk.bf16.mxu1 %vm1472_vm4, %v1815_v25  ;;  %vm1536_vm9 = vmpackc.low %vm487_vm3, %vm483_vm2  ;;  %vm489_vm10 = vcmp.eq.s32.totalorder %v434_v18, %v1968_v19  ;;  %vm493_vm11 = vcmp.eq.s32.totalorder %v435_v22, %v1968_v19  ;;  %vm491_vm13 = vcmp.eq.s32.totalorder %v434_v18, %v1972_v20  ;;  %v2279_v54 = vadd.s32 216, %v1941_v5  ;;  %p1755_p1 = pnand %p1754_p13, %p1748_p10 }
  0x46   : > { %1537 = vmatprep.subr.msk.bf16.mxu0 %vm1536_vm9, %v1815_v25  ;;  %vm1474_vm12 = vmpackc.low %vm484_vm6, %vm480_vm5  ;;  %vm495_vm14 = vcmp.eq.s32.totalorder %v435_v22, %v1972_v20  ;;  %vm488_vm1 = vcmp.eq.s32.totalorder %v434_v18, %v1976_v21  ;;  %vm492_vm2 = vcmp.eq.s32.totalorder %v435_v22, %v1976_v21  ;;  %vm490_vm4 = vcmp.eq.s32.totalorder %v434_v18, %v1984_v24 }
  0x47   : > { %1475 = vmatpush1.bf16.xpose.msk.msra.mxu1 %vm1474_vm12, %v1815_v25  ;;  %vm1538_vm15 = vmpackc.low %vm486_vm8, %vm482_vm7  ;;  %vm494_vm5 = vcmp.eq.s32.totalorder %v435_v22, %v1984_v24  ;;  %vm497_vm6 = vcmp.eq.s32.totalorder %v436_v26, %v1968_v19  ;;  %vm501_vm7 = vcmp.eq.s32.totalorder %v437_v27, %v1968_v19  ;;  %vm499_vm9 = vcmp.eq.s32.totalorder %v436_v26, %v1972_v20 }
  0x48   : > { %1539 = vmatpush1.bf16.xpose.msk.msra.mxu0 %vm1538_vm15, %v1815_v25  ;;  %vm1476_vm0 = vmpackc.low %vm493_vm11, %vm489_vm10  ;;  %vm503_vm10 = vcmp.eq.s32.totalorder %v437_v27, %v1972_v20  ;;  %vm500_vm15 = vcmp.eq.s32.totalorder %v437_v27, %v1976_v21  ;;  %v2315_v56 = vadd.s32 224, %v1941_v5  ;;  %v2335_v58 = vadd.s32 232, %v1941_v5 }
  0x49   : > { %1477 = vmatprep.subr.msk.bf16.mxu1 %vm1476_vm0, %v1815_v25  ;;  %vm1540_vm3 = vmpackc.low %vm495_vm14, %vm491_vm13  ;;  %vm496_vm14 = vcmp.eq.s32.totalorder %v436_v26, %v1976_v21  ;;  %vm498_vm0 = vcmp.eq.s32.totalorder %v436_v26, %v1984_v24  ;;  %v2338_v59 = vadd.s32 240, %v1941_v5  ;;  %v2387_v63 = vadd.s32 248, %v1941_v5 }
  0x4a   : > { %1541 = vmatprep.subr.msk.bf16.mxu0 %vm1540_vm3, %v1815_v25  ;;  %vm1478_vm8 = vmpackc.low %vm492_vm2, %vm488_vm1  ;;  %vm502_vm1 = vcmp.eq.s32.totalorder %v437_v27, %v1984_v24  ;;  %vm505_vm2 = vcmp.eq.s32.totalorder %v2022_v28, %v1968_v19  ;;  %vm509_vm3 = vcmp.eq.s32.totalorder %v2025_v29, %v1968_v19  ;;  %v446_v1 = vadd.s32 112, %v1941_v5 }
  0x4b   : > { %vm1542_vm11 = vmpackc.low %vm494_vm5, %vm490_vm4  ;;  %vm507_vm4 = vcmp.eq.s32.totalorder %v2022_v28, %v1972_v20  ;;  %vm511_vm5 = vcmp.eq.s32.totalorder %v2025_v29, %v1972_v20  ;;  %v447_v2 = vadd.s32 120, %v1941_v5  ;;  %v3105_v6 = vmov 0 }
  0x4c   : > { %vm1480_vm12 = vmpackc.low %vm501_vm7, %vm497_vm6  ;;  %vm504_vm7 = vcmp.eq.s32.totalorder %v2022_v28, %v1976_v21  ;;  %v3109_v7 = vmov 0  ;;  %v3113_v8 = vmov 0  ;;  %v3117_v12 = vmov 0 }
  0x4d   : > { %vm2027_vm13 = vmpackc.low %vm503_vm10, %vm499_vm9  ;;  %vm510_vm10 = vcmp.eq.s32.totalorder %v2025_v29, %v1984_v24  ;;  %v3119_v13 = vmov 0  ;;  %v3123_v14 = vmov 0  ;;  %v3125_v16 = vmov 0 }
  0x4e   : > { %vm2085_vm6 = vmpackc.low %vm500_vm15, %vm496_vm14  ;;  %vm515_vm14 = vcmp.eq.s32.totalorder %v2032_v31, %v1972_v20  ;;  %vm519_vm15 = vcmp.eq.s32.totalorder %v2035_v32, %v1972_v20  ;;  %v3127_v17 = vmov 0  ;;  %v3131_v18 = vmov 0 }
  0x4f   : > { %1479 = vmatpush1.bf16.xpose.msk.msra.mxu1 %vm1478_vm8, %v1815_v25  ;;  %vm508_vm8 = vcmp.eq.s32.totalorder %v2025_v29, %v1976_v21  ;;  %vm2109_vm9 = vmpackc.low %vm509_vm3, %vm505_vm2  ;;  %vm514_vm3 = vcmp.eq.s32.totalorder %v2032_v31, %v1984_v24  ;;  %v3133_v22 = vmov 0  ;;  %v448_v23 = vadd.s32 128, %v1941_v5 }
  0x50   : > { %1543 = vmatpush1.bf16.xpose.msk.msra.mxu0 %vm1542_vm11, %v1815_v25  ;;  %1481 = vmatprep.subr.msk.bf16.mxu1 %vm1480_vm12, %v1815_v25  ;;  %vm2097_vm11 = vmpackc.low %vm502_vm1, %vm498_vm0  ;;  %vm525_vm12 = vcmp.eq.s32.totalorder %v2041_v34, %v1968_v19  ;;  %vm533_vm0 = vcmp.eq.s32.totalorder %v2048_v36, %v1968_v19  ;;  %v449_v26 = vadd.s32 136, %v1941_v5  ;;  %v3137_v27 = vmov 0 }
  0x51   : > { %1545 = vmatprep.subr.msk.bf16.mxu0 %vm2027_vm13, %v1815_v25  ;;  %vm2130_vm2 = vmpackc.low %vm511_vm5, %vm507_vm4  ;;  %vm521_vm5 = vcmp.eq.s32.totalorder %v2038_v33, %v1968_v19  ;;  %vm531_vm4 = vcmp.eq.s32.totalorder %v2045_v35, %v1972_v20  ;;  %vm3092_vm13 = vcmp.eq.s32.totalorder %v2038_v33, %v1976_v21  ;;  %v3148_v29 = vmov 0 }
  0x52   : > { %vm2213_vm1 = vmpackc.low %vm508_vm8, %vm504_vm7  ;;  %v3217_v47 = vmov 0  ;;  %v3225_v49 = vmov 0 }
  0x57   : > { %1483 = vmatpush1.bf16.xpose.msk.msra.mxu1 %vm2085_vm6, %v1815_v25  ;;  %vm523_vm6 = vcmp.eq.s32.totalorder %v2038_v33, %v1972_v20 }
  0x58   : > { %1547 = vmatpush1.bf16.xpose.msk.msra.mxu0 %vm2097_vm11, %v1815_v25  ;;  %1485 = vmatprep.subr.msk.bf16.mxu1 %vm2109_vm9, %v1815_v25  ;;  %vm3071_vm9 = vcmp.eq.s32.totalorder %v2022_v28, %v1984_v24  ;;  %vm3074_vm11 = vcmp.eq.s32.totalorder %v2032_v31, %v1968_v19  ;;  %v3142_v28 = vmov 0 }
  0x59   : > { %1549 = vmatprep.subr.msk.bf16.mxu0 %vm2130_vm2, %v1815_v25  ;;  %vm522_vm2 = vcmp.eq.s32.totalorder %v2038_v33, %v1984_v24  ;;  %vm2231_vm7 = vmpackc.low %vm510_vm10, %vm3071_vm9  ;;  %vm3075_vm10 = vcmp.eq.s32.totalorder %v2035_v32, %v1968_v19 }
  0x5a   : > { %vm2249_vm9 = vmpackc.low %vm3075_vm10, %vm3074_vm11  ;;  %vm529_vm10 = vcmp.eq.s32.totalorder %v2045_v35, %v1968_v19 }
  0x5b   : > { %vm2268_vm11 = vmpackc.low %vm519_vm15, %vm515_vm14  ;;  %vm3081_vm15 = vcmp.eq.s32.totalorder %v2035_v32, %v1976_v21 }
  0x5f   : > { %1487 = vmatpush1.bf16.xpose.msk.msra.mxu1 %vm2213_vm1, %v1815_v25  ;;  %vm3080_vm1 = vcmp.eq.s32.totalorder %v2032_v31, %v1976_v21  ;;  %v3157_v31 = vmov 0 }
  0x60   : > { %1551 = vmatpush1.bf16.xpose.msk.msra.mxu0 %vm2231_vm7, %v1815_v25  ;;  %1489 = vmatprep.subr.msk.bf16.mxu1 %vm2249_vm9, %v1815_v25  ;;  %vm2304_vm14 = vmpackc.low %vm3081_vm15, %vm3080_vm1  ;;  %vm3084_vm9 = vcmp.eq.s32.totalorder %v2035_v32, %v1984_v24  ;;  %vm535_vm1 = vcmp.eq.s32.totalorder %v2048_v36, %v1972_v20 }
  0x61   : > { %1553 = vmatprep.subr.msk.bf16.mxu0 %vm2268_vm11, %v1815_v25  ;;  %vm2326_vm15 = vmpackc.low %vm3084_vm9, %vm514_vm3  ;;  %vm537_vm9 = vcmp.eq.s32.totalorder %v446_v1, %v1968_v19  ;;  %vm3112_vm11 = vcmp.eq.s32.totalorder %v2054_v38, %v1976_v21 }
  0x62   : > { %vm2346_vm3 = vmpackc.low %vm525_vm12, %vm521_vm5  ;;  %vm3089_vm12 = vcmp.eq.s32.totalorder %v2041_v34, %v1972_v20 }
  0x63   : > { %vm2364_vm5 = vmpackc.low %vm3089_vm12, %vm523_vm6  ;;  %vm3093_vm6 = vcmp.eq.s32.totalorder %v2041_v34, %v1976_v21 }
  0x64   : > { %vm2382_vm12 = vmpackc.low %vm3093_vm6, %vm3092_vm13  ;;  %vm3096_vm13 = vcmp.eq.s32.totalorder %v2041_v34, %v1984_v24 }
  0x65   : > { %v3095_v62 = vsel %vm2382_vm12, 4294967295, %v3094_v62  ;;  %vm2401_vm6 = vmpackc.low %vm3096_vm13, %vm522_vm2  ;;  %vm541_vm13 = vcmp.eq.s32.totalorder %v447_v2, %v1968_v19  ;;  %vm3111_vm2 = vcmp.eq.s32.totalorder %v2051_v37, %v1976_v21 }
  0x66   : > { %v3098_v0 = vsel %vm2401_vm6, 4294967295, %v3097_v0  ;;  %vm2415_vm7 = vmpackc.low %vm533_vm0, %vm529_vm10  ;;  %vm3103_vm10 = vcmp.eq.s32.totalorder %v2051_v37, %v1968_v19 }
  0x67   : > { %v3100_v3 = vsel %vm2415_vm7, 4294967295, %v3099_v3  ;;  %1491 = vmatpush1.bf16.xpose.msk.msra.mxu1 %vm2304_vm14, %v1815_v25  ;;  %vm2436_vm0 = vmpackc.low %vm535_vm1, %vm531_vm4  ;;  %vm3104_vm14 = vcmp.eq.s32.totalorder %v2054_v38, %v1968_v19  ;;  %vm528_vm4 = vcmp.eq.s32.totalorder %v2045_v35, %v1976_v21  ;;  %vm3107_vm1 = vcmp.eq.s32.totalorder %v2051_v37, %v1972_v20 }
  0x68   : > { %v3102_v4 = vsel %vm2436_vm0, 4294967295, %v3101_v4  ;;  %1555 = vmatpush1.bf16.xpose.msk.msra.mxu0 %vm2326_vm15, %v1815_v25  ;;  %1493 = vmatprep.subr.msk.bf16.mxu1 %vm2346_vm3, %v1815_v25  ;;  %vm2452_vm8 = vmpackc.low %vm3104_vm14, %vm3103_vm10  ;;  %vm532_vm15 = vcmp.eq.s32.totalorder %v2048_v36, %v1976_v21  ;;  %vm3108_vm3 = vcmp.eq.s32.totalorder %v2054_v38, %v1972_v20  ;;  %vm530_vm14 = vcmp.eq.s32.totalorder %v2045_v35, %v1984_v24 }
  0x69   : > { %v3106_v6 = vsel %vm2452_vm8, 4294967295, %v3105_v6  ;;  %1557 = vmatprep.subr.msk.bf16.mxu0 %vm2364_vm5, %v1815_v25  ;;  %vm2469_vm10 = vmpackc.low %vm3108_vm3, %vm3107_vm1  ;;  %vm534_vm5 = vcmp.eq.s32.totalorder %v2048_v36, %v1984_v24  ;;  %vm539_vm3 = vcmp.eq.s32.totalorder %v446_v1, %v1972_v20  ;;  %vm3115_vm8 = vcmp.eq.s32.totalorder %v2051_v37, %v1984_v24 }
  0x6a   : > { %v3110_v7 = vsel %vm2469_vm10, 4294967295, %v3109_v7  ;;  %vm2485_vm1 = vmpackc.low %vm3112_vm11, %vm3111_vm2  ;;  %vm543_vm10 = vcmp.eq.s32.totalorder %v447_v2, %v1972_v20  ;;  %vm3116_vm0 = vcmp.eq.s32.totalorder %v2054_v38, %v1984_v24  ;;  %vm3121_vm11 = vcmp.eq.s32.totalorder %v2061_v39, %v1968_v19 }
  0x6b   : > { %v3114_v8 = vsel %vm2485_vm1, 4294967295, %v3113_v8  ;;  %vm2497_vm7 = vmpackc.low %vm3116_vm0, %vm3115_vm8  ;;  %vm3122_vm2 = vcmp.eq.s32.totalorder %v2064_v40, %v1968_v19  ;;  %vm3129_vm0 = vcmp.eq.s32.totalorder %v2061_v39, %v1972_v20 }
  0x6c   : > { %v3118_v12 = vsel %vm2497_vm7, 4294967295, %v3117_v12  ;;  %vm2501_vm6 = vmpackc.low %vm532_vm15, %vm528_vm4  ;;  %vm3130_vm4 = vcmp.eq.s32.totalorder %v2064_v40, %v1972_v20 }
  0x6d   : > { %v3120_v13 = vsel %vm2501_vm6, 4294967295, %v3119_v13  ;;  %vm2511_vm1 = vmpackc.low %vm3122_vm2, %vm3121_vm11 }
  0x6e   : > { %v3124_v14 = vsel %vm2511_vm1, 4294967295, %v3123_v14  ;;  %vm2515_vm12 = vmpackc.low %vm534_vm5, %vm530_vm14  ;;  %vm3140_vm5 = vcmp.eq.s32.totalorder %v2061_v39, %v1984_v24  ;;  %vm3156_vm1 = vcmp.eq.s32.totalorder %v2075_v42, %v1976_v21 }
  0x6f   : > { %v3126_v16 = vsel %vm2515_vm12, 4294967295, %v3125_v16  ;;  %vm2519_vm8 = vmpackc.low %vm541_vm13, %vm537_vm9  ;;  %vm3135_vm9 = vcmp.eq.s32.totalorder %v2061_v39, %v1976_v21  ;;  %vm3136_vm13 = vcmp.eq.s32.totalorder %v2064_v40, %v1976_v21 }
  0x70   : > { %v3128_v17 = vsel %vm2519_vm8, 4294967295, %v3127_v17  ;;  %vm2529_vm15 = vmpackc.low %vm3130_vm4, %vm3129_vm0  ;;  %vm3144_vm0 = vnez %v3098_v0  ;;  %vm3145_vm4 = vnez %v3100_v3 }
  0x71   : > { %v3132_v18 = vsel %vm2529_vm15, 4294967295, %v3131_v18  ;;  %vm2533_vm11 = vmpackc.low %vm543_vm10, %vm539_vm3  ;;  %vm3139_vm10 = vnez %v3095_v62  ;;  %vm3141_vm3 = vcmp.eq.s32.totalorder %v2064_v40, %v1984_v24  ;;  %1559 = vmatpush1.bf16.xpose.msk.msra.mxu0 %vm3144_vm0, %v1815_v25  ;;  %vm540_vm0 = vcmp.eq.s32.totalorder %v447_v2, %v1976_v21 }
  0x72   : > { %v3134_v22 = vsel %vm2533_vm11, 4294967295, %v3133_v22  ;;  %vm2545_vm14 = vmpackc.low %vm3136_vm13, %vm3135_vm9  ;;  %1495 = vmatpush1.bf16.xpose.msk.msra.mxu1 %vm3139_vm10, %v1815_v25  ;;  %vm3146_vm9 = vcmp.eq.s32.totalorder %v2072_v41, %v1968_v19  ;;  %vm3147_vm13 = vcmp.eq.s32.totalorder %v2075_v42, %v1968_v19  ;;  %vm3155_vm15 = vcmp.eq.s32.totalorder %v2072_v41, %v1976_v21 }
  0x73   : > { %v3138_v27 = vsel %vm2545_vm14, 4294967295, %v3137_v27  ;;  %vm2558_vm2 = vmpackc.low %vm3141_vm3, %vm3140_vm5  ;;  %1497 = vmatprep.subr.msk.bf16.mxu1 %vm3145_vm4, %v1815_v25  ;;  %vm3150_vm5 = vnez %v3102_v4  ;;  %vm536_vm3 = vcmp.eq.s32.totalorder %v446_v1, %v1976_v21  ;;  %vm3151_vm4 = vcmp.eq.s32.totalorder %v2072_v41, %v1972_v20 }
  0x74   : > { %v3143_v28 = vsel %vm2558_vm2, 4294967295, %v3142_v28  ;;  %vm2574_vm10 = vmpackc.low %vm3147_vm13, %vm3146_vm9  ;;  %1561 = vmatprep.subr.msk.bf16.mxu0 %vm3150_vm5, %v1815_v25  ;;  %vm3152_vm2 = vcmp.eq.s32.totalorder %v2075_v42, %v1972_v20  ;;  %vm538_vm9 = vcmp.eq.s32.totalorder %v446_v1, %v1984_v24  ;;  %vm542_vm13 = vcmp.eq.s32.totalorder %v447_v2, %v1984_v24 }
  0x75   : > { %v3149_v29 = vsel %vm2574_vm10, 4294967295, %v3148_v29  ;;  %vm2589_vm14 = vmpackc.low %vm3152_vm2, %vm3151_vm4  ;;  %vm545_vm5 = vcmp.eq.s32.totalorder %v448_v23, %v1968_v19  ;;  %vm549_vm10 = vcmp.eq.s32.totalorder %v449_v26, %v1968_v19  ;;  %vm547_vm2 = vcmp.eq.s32.totalorder %v448_v23, %v1972_v20 }
  0x76   : > { %v3154_v30 = vsel %vm2589_vm14, 4294967295, %v3153_v30  ;;  %vm2603_vm7 = vmpackc.low %vm3156_vm1, %vm3155_vm15  ;;  %vm551_vm4 = vcmp.eq.s32.totalorder %v449_v26, %v1972_v20  ;;  %vm3159_vm14 = vcmp.eq.s32.totalorder %v2072_v41, %v1984_v24  ;;  %vm3160_vm11 = vcmp.eq.s32.totalorder %v2075_v42, %v1984_v24 }
  0x77   : > { %v3158_v31 = vsel %vm2603_vm7, 4294967295, %v3157_v31  ;;  %vm2615_vm8 = vmpackc.low %vm3160_vm11, %vm3159_vm14  ;;  %vm3165_vm1 = vcmp.eq.s32.totalorder %v2122_v46, %v1968_v19  ;;  %vm3166_vm15 = vcmp.eq.s32.totalorder %v2178_v48, %v1968_v19  ;;  %vm3173_vm14 = vcmp.eq.s32.totalorder %v2122_v46, %v1972_v20 }
  0x78   : > { %vm2619_vm12 = vmpackc.low %vm540_vm0, %vm536_vm3  ;;  %vm3174_vm3 = vcmp.eq.s32.totalorder %v2178_v48, %v1972_v20  ;;  %v3186_v40 = vmov 0  ;;  %v3192_v41 = vmov 0  ;;  %v3197_v42 = vmov 0 }
  0x79   : > { %vm2629_vm7 = vmpackc.low %vm3166_vm15, %vm3165_vm1 }
  0x7a   : > { %vm2633_vm6 = vmpackc.low %vm542_vm13, %vm538_vm9  ;;  %vm3180_vm9 = vcmp.eq.s32.totalorder %v2178_v48, %v1976_v21 }
  0x7b   : > { %vm2637_vm11 = vmpackc.low %vm549_vm10, %vm545_vm5  ;;  %vm3179_vm10 = vcmp.eq.s32.totalorder %v2122_v46, %v1976_v21  ;;  %vm3183_vm5 = vnez %v3120_v13 }
  0x7c   : > { %vm2647_vm0 = vmpackc.low %vm3174_vm3, %vm3173_vm14  ;;  %1499 = vmatpush1.bf16.xpose.msk.msra.mxu1 %vm3183_vm5, %v1815_v25  ;;  %vm3188_vm14 = vnez %v3126_v16  ;;  %vm3189_vm3 = vnez %v3128_v17 }
  0x7d   : > { %vm2651_vm1 = vmpackc.low %vm551_vm4, %vm547_vm2  ;;  %vm3184_vm2 = vcmp.eq.s32.totalorder %v2122_v46, %v1984_v24  ;;  %vm3185_vm4 = vcmp.eq.s32.totalorder %v2178_v48, %v1984_v24  ;;  %1563 = vmatpush1.bf16.xpose.msk.msra.mxu0 %vm3188_vm14, %v1815_v25  ;;  %1501 = vmatprep.subr.msk.bf16.mxu1 %vm3189_vm3, %v1815_v25  ;;  %vm3196_vm14 = vcmp.eq.s32.totalorder %v2279_v54, %v1972_v20  ;;  %v3213_v46 = vmov 0 }
  0x7e   : > { %vm2661_vm13 = vmpackc.low %vm3180_vm9, %vm3179_vm10  ;;  %vm3190_vm10 = vcmp.eq.s32.totalorder %v2260_v52, %v1968_v19  ;;  %vm3191_vm9 = vcmp.eq.s32.totalorder %v2279_v54, %v1968_v19  ;;  %v3221_v48 = vmov 0 }
  0x7f   : > { %vm2674_vm15 = vmpackc.low %vm3185_vm4, %vm3184_vm2  ;;  %vm3194_vm2 = vnez %v3134_v22  ;;  %vm3195_vm4 = vcmp.eq.s32.totalorder %v2260_v52, %v1972_v20 }
  0x80   : > { %v3187_v40 = vsel %vm2674_vm15, 4294967295, %v3186_v40  ;;  %vm2690_vm5 = vmpackc.low %vm3191_vm9, %vm3190_vm10  ;;  %1565 = vmatprep.subr.msk.bf16.mxu0 %vm3194_vm2, %v1815_v25  ;;  %vm3199_vm10 = vcmp.eq.s32.totalorder %v2260_v52, %v1976_v21  ;;  %vm3200_vm9 = vcmp.eq.s32.totalorder %v2279_v54, %v1976_v21  ;;  %vm3203_vm2 = vcmp.eq.s32.totalorder %v2260_v52, %v1984_v24 }
  0x81   : > { %v3193_v41 = vsel %vm2690_vm5, 4294967295, %v3192_v41  ;;  %vm2703_vm3 = vmpackc.low %vm3196_vm14, %vm3195_vm4  ;;  %vm3204_vm15 = vcmp.eq.s32.totalorder %v2279_v54, %v1984_v24  ;;  %vm3207_vm14 = vcmp.eq.s32.totalorder %v2315_v56, %v1968_v19 }
  0x82   : > { %v3198_v42 = vsel %vm2703_vm3, 4294967295, %v3197_v42  ;;  %vm2713_vm5 = vmpackc.low %vm3200_vm9, %vm3199_vm10  ;;  %vm3208_vm3 = vcmp.eq.s32.totalorder %v2335_v58, %v1968_v19  ;;  %vm3211_vm9 = vcmp.eq.s32.totalorder %v2315_v56, %v1972_v20 }
  0x83   : > { %v3202_v43 = vsel %vm2713_vm5, 4294967295, %v3201_v43  ;;  %vm2723_vm4 = vmpackc.low %vm3204_vm15, %vm3203_vm2  ;;  %vm3212_vm5 = vcmp.eq.s32.totalorder %v2335_v58, %v1972_v20  ;;  %vm3215_vm2 = vcmp.eq.s32.totalorder %v2315_v56, %v1976_v21 }
  0x84   : > { %v3206_v44 = vsel %vm2723_vm4, 4294967295, %v3205_v44  ;;  %vm2733_vm10 = vmpackc.low %vm3208_vm3, %vm3207_vm14  ;;  %vm3216_vm4 = vcmp.eq.s32.totalorder %v2335_v58, %v1976_v21  ;;  %1503 = vmatpush1.bf16.xpose.msk.msra.mxu1 %vm2619_vm12, %v1815_v25  ;;  %vm3220_vm14 = vcmp.eq.s32.totalorder %v2335_v58, %v1984_v24  ;;  %vm3223_vm12 = vcmp.eq.s32.totalorder %v2338_v59, %v1968_v19 }
  0x85   : > { %v3210_v45 = vsel %vm2733_vm10, 4294967295, %v3209_v45  ;;  %vm2743_vm15 = vmpackc.low %vm3212_vm5, %vm3211_vm9  ;;  %vm3219_vm5 = vcmp.eq.s32.totalorder %v2315_v56, %v1984_v24  ;;  %1567 = vmatpush1.bf16.xpose.msk.msra.mxu0 %vm2633_vm6, %v1815_v25  ;;  %1505 = vmatprep.subr.msk.bf16.mxu1 %vm2637_vm11, %v1815_v25  ;;  %vm544_vm6 = vcmp.eq.s32.totalorder %v448_v23, %v1976_v21  ;;  %vm3227_vm11 = vcmp.eq.s32.totalorder %v2338_v59, %v1972_v20 }
  0x86   : > { %v3214_v46 = vsel %vm2743_vm15, 4294967295, %v3213_v46  ;;  %vm2753_vm3 = vmpackc.low %vm3216_vm4, %vm3215_vm2  ;;  %vm3224_vm4 = vcmp.eq.s32.totalorder %v2387_v63, %v1968_v19  ;;  %1569 = vmatprep.subr.msk.bf16.mxu0 %vm2651_vm1, %v1815_v25  ;;  %v3229_v19 = vmov 0  ;;  %vm3231_vm1 = vcmp.eq.s32.totalorder %v2338_v59, %v1976_v21 }
  0x87   : > { %v3218_v47 = vsel %vm2753_vm3, 4294967295, %v3217_v47  ;;  %vm2766_vm9 = vmpackc.low %vm3220_vm14, %vm3219_vm5  ;;  %vm548_vm5 = vcmp.eq.s32.totalorder %v449_v26, %v1976_v21  ;;  %vm3228_vm14 = vcmp.eq.s32.totalorder %v2387_v63, %v1972_v20 }
  0x88   : > { %v3222_v48 = vsel %vm2766_vm9, 4294967295, %v3221_v48  ;;  %vm2782_vm2 = vmpackc.low %vm3224_vm4, %vm3223_vm12  ;;  %vm546_vm12 = vcmp.eq.s32.totalorder %v448_v23, %v1984_v24  ;;  %vm550_vm4 = vcmp.eq.s32.totalorder %v449_v26, %v1984_v24 }
  0x89   : > { %v3226_v49 = vsel %vm2782_vm2, 4294967295, %v3225_v49  ;;  %vm2797_vm9 = vmpackc.low %vm3228_vm14, %vm3227_vm11  ;;  %vm3232_vm2 = vcmp.eq.s32.totalorder %v2387_v63, %v1976_v21  ;;  %vm3235_vm11 = vcmp.eq.s32.totalorder %v2338_v59, %v1984_v24  ;;  %vm3236_vm14 = vcmp.eq.s32.totalorder %v2387_v63, %v1984_v24  ;;  %v222_v24 = vld [vmem:[%s199_s24] sm:$0xf]  ;;  %s2984_s24 = sld [smem:[%s1615_s16 + %s3268_s30]] }
  0x8a   : > { %v3230_v19 = vsel %vm2797_vm9, 4294967295, %v3229_v19  ;;  %vm2809_vm3 = vmpackc.low %vm3232_vm2, %vm3231_vm1  ;;  %vm3239_vm2 = vnez %v3106_v6  ;;  %vm3240_vm1 = vnez %v3110_v7  ;;  %v2916_v51 = vrot.slane %v222_v24, %v233_v11 }
  0x8b   : > { %vm2819_vm9 = vmpackc.low %vm3236_vm14, %vm3235_vm11  ;;  %vm3241_vm11 = vnez %v3114_v8  ;;  %vm3248_vm14 = vnez %v3154_v30  ;;  %v2920_v53 = vrot.slane %v222_v24, %v237_v9  ;;  %v2932_v59 = vrot.slane %v222_v24, %v245_v10 }
  0x8c   : > { %vm1506_vm15 = vmpackc.low %vm548_vm5, %vm544_vm6  ;;  %vm3242_vm6 = vnez %v3118_v12  ;;  %vm3245_vm5 = vnez %v3138_v27 }
  0x8d   : > { %vm1570_vm10 = vmpackc.low %vm550_vm4, %vm546_vm12  ;;  %1507 = vmatpush1.bf16.xpose.msk.msra.mxu1 %vm1506_vm15, %v1815_v25  ;;  %vm3243_vm15 = vnez %v3124_v14  ;;  %vm3246_vm12 = vnez %v3143_v28  ;;  %vm3247_vm4 = vnez %v3149_v29 }
  0x8e   : > { %1571 = vmatpush1.bf16.xpose.msk.msra.mxu0 %vm1570_vm10, %v1815_v25  ;;  %1509 = vmatprep.subr.msk.bf16.mxu1 %vm3239_vm2, %v1815_v25  ;;  %vm3244_vm10 = vnez %v3132_v18  ;;  %vm3249_vm2 = vnez %v3158_v31 }
  0x8f   : > { %1573 = vmatprep.subr.msk.bf16.mxu0 %vm3240_vm1, %v1815_v25  ;;  %vm3250_vm1 = vnez %v3187_v40  ;;  %s1471_s30 = sshll.u32 %s2984_s24, 8 }
  0x90   : > { %s3002_s19 = scalar_lea.hbm %s3055_s5, %s1471_s30 }
  0x95   : > { %1511 = vmatpush1.bf16.xpose.msk.msra.mxu1 %vm3241_vm11, %v1815_v25  ;;  %vm3254_vm11 = vnez %v3206_v44 }
  0x96   : > { %1575 = vmatpush1.bf16.xpose.msk.msra.mxu0 %vm3242_vm6, %v1815_v25  ;;  %1513 = vmatprep.subr.msk.bf16.mxu1 %vm3243_vm15, %v1815_v25  ;;  %vm3256_vm6 = vnez %v3214_v46  ;;  %vm3257_vm15 = vnez %v3218_v47 }
  0x97   : > { %1577 = vmatprep.subr.msk.bf16.mxu0 %vm3244_vm10, %v1815_v25  ;;  %vm3258_vm10 = vnez %v3222_v48 }
  0x9d   : > { %1515 = vmatpush1.bf16.xpose.msk.msra.mxu1 %vm3245_vm5, %v1815_v25  ;;  %vm3259_vm5 = vnez %v3226_v49 }
  0x9e   : > { %1579 = vmatpush1.bf16.xpose.msk.msra.mxu0 %vm3246_vm12, %v1815_v25  ;;  %1517 = vmatprep.subr.msk.bf16.mxu1 %vm3247_vm4, %v1815_v25  ;;  %vm3260_vm12 = vnez %v3230_v19 }
  0x9f   : > { %1581 = vmatprep.subr.msk.bf16.mxu0 %vm3248_vm14, %v1815_v25 }
  0xa5   : > { %1519 = vmatpush1.bf16.xpose.msk.msra.mxu1 %vm3249_vm2, %v1815_v25 }
  0xa6   : > { %1583 = vmatpush1.bf16.xpose.msk.msra.mxu0 %vm2615_vm8, %v1815_v25  ;;  %1521 = vmatprep.subr.msk.bf16.mxu1 %vm2629_vm7, %v1815_v25  ;;  %vm3251_vm8 = vnez %v3193_v41  ;;  %vm3252_vm7 = vnez %v3198_v42 }
  0xa7   : > { %1585 = vmatprep.subr.msk.bf16.mxu0 %vm2647_vm0, %v1815_v25  ;;  %vm3253_vm0 = vnez %v3202_v43 }
  0xad   : > { %1523 = vmatpush1.bf16.xpose.msk.msra.mxu1 %vm2661_vm13, %v1815_v25  ;;  %vm3255_vm13 = vnez %v3210_v45 }
  0xae   : > { %1587 = vmatpush1.bf16.xpose.msk.msra.mxu0 %vm3250_vm1, %v1815_v25  ;;  %1525 = vmatprep.subr.msk.bf16.mxu1 %vm3251_vm8, %v1815_v25 }
  0xaf   : > { %1589 = vmatprep.subr.msk.bf16.mxu0 %vm3252_vm7, %v1815_v25 }
  0xb5   : > { %1527 = vmatpush1.bf16.xpose.msk.msra.mxu1 %vm3253_vm0, %v1815_v25 }
  0xb6   : > { %1591 = vmatpush1.bf16.xpose.msk.msra.mxu0 %vm3254_vm11, %v1815_v25  ;;  %1529 = vmatprep.subr.msk.bf16.mxu1 %vm3255_vm13, %v1815_v25 }
  0xb7   : > { %1593 = vmatprep.subr.msk.bf16.mxu0 %vm3256_vm6, %v1815_v25 }
  0xb8   : > { %v254_v21 = vpop.permute.xlu0 %253  ;;  %v264_v52 = vpop.permute.xlu1 %263 }
  0xb9   : > { %v294_v54 = vsub.f32 %v2916_v51, %v264_v52  ;;  %v295_v56 = vsub.f32 %v2920_v53, %v264_v52  ;;  %v286_v57 = vsub.f32 %v2916_v51, %v254_v21  ;;  %v287_v3 = vsub.f32 %v2920_v53, %v254_v21 }
  0xba   : > { %v289_v6 = vsub.f32 %v2932_v59, %v254_v21 }
  0xbb   : > { %v322_v11 = vmul.f32 %v294_v54, %v294_v54  ;;  %v323_v60 = vmul.f32 %v295_v56, %v295_v56  ;;  %v314_v62 = vmul.f32 %v286_v57, %v286_v57  ;;  %v315_v18 = vmul.f32 %v287_v3, %v287_v3 }
  0xbc   : > { %v259_v55 = vpop.permute.xlu0 %258  ;;  %v269_v27 = vpop.permute.xlu1 %268  ;;  %v317_v28 = vmul.f32 %v289_v6, %v289_v6 }
  0xbd   : > { %1531 = vmatpush1.bf16.xpose.msk.msra.mxu1 %vm3257_vm15, %v1815_v25  ;;  %v291_v58 = vsub.f32 %v2920_v53, %v259_v55  ;;  %v290_v63 = vsub.f32 %v2916_v51, %v259_v55  ;;  %v350_v1 = vmul.f32 -12.004999, %v322_v11  ;;  %v293_v2 = vsub.f32 %v2932_v59, %v259_v55 }
  0xbe   : > { %1595 = vmatpush1.bf16.xpose.msk.msra.mxu0 %vm3258_vm10, %v1815_v25  ;;  %1533 = vmatprep.subr.msk.bf16.mxu1 %vm3259_vm5, %v1815_v25  ;;  %v351_v5 = vmul.f32 -12.004999, %v323_v60  ;;  %v342_v7 = vmul.f32 -12.004999, %v314_v62  ;;  %v299_v30 = vsub.f32 %v2920_v53, %v269_v27  ;;  %v298_v32 = vsub.f32 %v2916_v51, %v269_v27 }
  0xbf   : > { %1597 = vmatprep.subr.msk.bf16.mxu0 %vm3260_vm12, %v1815_v25  ;;  %v319_v0 = vmul.f32 %v291_v58, %v291_v58  ;;  %v318_v12 = vmul.f32 %v290_v63, %v290_v63  ;;  %v386_v14 = vmul.f32 1.442695, %v350_v1  ;;  %v321_v17 = vmul.f32 %v293_v2, %v293_v2 }
  0xc0   : > { %v388_v23 = vmul.f32 1.442695, %v351_v5  ;;  %v370_v29 = vmul.f32 1.442695, %v342_v7  ;;  %v274_v35 = vpop.permute.xlu0 %273  ;;  %v343_v38 = vmul.f32 -12.004999, %v315_v18  ;;  %v327_v42 = vmul.f32 %v299_v30, %v299_v30  ;;  %v279_v48 = vpop.permute.xlu1 %278 }
  0xc1   : > { %v347_v13 = vmul.f32 -12.004999, %v319_v0  ;;  %v346_v33 = vmul.f32 -12.004999, %v318_v12  ;;  %1665 = vpow2.f32 %v386_v14  ;;  %v349_v37 = vmul.f32 -12.004999, %v321_v17 }
  0xc2   : > { %1667 = vpow2.f32 %v388_v23  ;;  %v345_v41 = vmul.f32 -12.004999, %v317_v28  ;;  %v303_v43 = vsub.f32 %v2920_v53, %v274_v35  ;;  %v372_v44 = vmul.f32 1.442695, %v343_v38 }
  0xc3   : > { %v380_v34 = vmul.f32 1.442695, %v347_v13  ;;  %1669 = vpow2.f32 %v370_v29  ;;  %v301_v46 = vsub.f32 %v2932_v59, %v269_v27  ;;  %v378_v47 = vmul.f32 1.442695, %v346_v33 }
  0xc4   : > { %v326_v49 = vmul.f32 %v298_v32, %v298_v32  ;;  %v384_v50 = vmul.f32 1.442695, %v349_v37  ;;  %v307_v54 = vsub.f32 %v2920_v53, %v279_v48  ;;  %v305_v58 = vsub.f32 %v2932_v59, %v274_v35  ;;  %v284_v11 = vpop.permute.xlu0 %283 }
  0xc5   : > { %1535 = vmatpush1.bf16.xpose.msk.msra.mxu1 %vm2809_vm3, %v1815_v25  ;;  %1671 = vpow2.f32 %v380_v34  ;;  %v329_v57 = vmul.f32 %v301_v46, %v301_v46  ;;  %v311_v3 = vsub.f32 %v2920_v53, %v284_v11  ;;  %v313_v32 = vsub.f32 %v2932_v59, %v284_v11 }
  0xc6   : > { %1599 = vmatpush1.bf16.xpose.msk.msra.mxu0 %vm2819_vm9, %v1815_v25  ;;  %v2925_v25 = vrot.slane %v222_v24, %v241_v15  ;;  %v297_v15 = vsub.f32 %v2932_v59, %v264_v52  ;;  %1673 = vpow2.f32 %v372_v44  ;;  %v376_v24 = vmul.f32 1.442695, %v345_v41 }
  0xc7   : > { %v335_v1 = vmul.f32 %v307_v54, %v307_v54  ;;  %v357_v5 = vmul.f32 -12.004999, %v329_v57  ;;  %v333_v6 = vmul.f32 %v305_v58, %v305_v58  ;;  %v341_v46 = vmul.f32 %v313_v32, %v313_v32 }
  0xc8   : > { %v296_v9 = vsub.f32 %v2925_v25, %v264_v52  ;;  %v288_v61 = vsub.f32 %v2925_v25, %v254_v21  ;;  %v325_v8 = vmul.f32 %v297_v15, %v297_v15  ;;  %v292_v16 = vsub.f32 %v2925_v25, %v259_v55 }
  0xc9   : > { %v300_v45 = vsub.f32 %v2925_v25, %v269_v27  ;;  %v302_v21 = vsub.f32 %v2916_v51, %v274_v35  ;;  %v355_v52 = vmul.f32 -12.004999, %v327_v42  ;;  %v331_v55 = vmul.f32 %v303_v43, %v303_v43 }
  0xca   : > { %v324_v4 = vmul.f32 %v296_v9, %v296_v9  ;;  %v316_v10 = vmul.f32 %v288_v61, %v288_v61  ;;  %v353_v31 = vmul.f32 -12.004999, %v325_v8  ;;  %v320_v36 = vmul.f32 %v292_v16, %v292_v16 }
  0xcb   : > { %v328_v56 = vmul.f32 %v300_v45, %v300_v45  ;;  %v354_v9 = vmul.f32 -12.004999, %v326_v49  ;;  %v306_v61 = vsub.f32 %v2916_v51, %v279_v48  ;;  %v304_v62 = vsub.f32 %v2925_v25, %v274_v35  ;;  %v2952_v63 = vpop.eup %1665 }
  0xcc   : > { %v352_v22 = vmul.f32 -12.004999, %v324_v4  ;;  %v344_v26 = vmul.f32 -12.004999, %v316_v10  ;;  %v348_v19 = vmul.f32 -12.004999, %v320_v36  ;;  %v330_v15 = vmul.f32 %v302_v21, %v302_v21  ;;  %v1668_v4 = vpop.eup %1667 }
  0xcd   : > { %v392_v20 = vmul.f32 1.442695, %v353_v31  ;;  %v396_v0 = vmul.f32 1.442695, %v355_v52  ;;  %v359_v2 = vmul.f32 -12.004999, %v331_v55  ;;  %v309_v10 = vsub.f32 %v2932_v59, %v279_v48  ;;  %v1670_v7 = vpop.eup %1669 }
  0xce   : > { %v390_v39 = vmul.f32 1.442695, %v352_v22  ;;  %v374_v40 = vmul.f32 1.442695, %v344_v26  ;;  %v382_v60 = vmul.f32 1.442695, %v348_v19  ;;  %v334_v13 = vmul.f32 %v306_v61, %v306_v61 }
  0xcf   : > { %v356_v8 = vmul.f32 -12.004999, %v328_v56  ;;  %v394_v12 = vmul.f32 1.442695, %v354_v9  ;;  %v1672_v14 = vpop.eup %1671  ;;  %v308_v16 = vsub.f32 %v2925_v25, %v279_v48  ;;  %v332_v17 = vmul.f32 %v304_v62, %v304_v62 }
  0xd0   : > { %1675 = vpow2.f32 %v390_v39  ;;  %v358_v18 = vmul.f32 -12.004999, %v330_v15  ;;  %v310_v22 = vsub.f32 %v2916_v51, %v284_v11  ;;  %v1674_v23 = vpop.eup %1673  ;;  %v363_v53 = vmul.f32 -12.004999, %v335_v1 }
  0xd1   : > { %1677 = vpow2.f32 %v374_v40  ;;  %v404_v26 = vmul.f32 1.442695, %v359_v2  ;;  %v339_v27 = vmul.f32 %v311_v3, %v311_v3  ;;  %v400_v29 = vmul.f32 1.442695, %v357_v5  ;;  %942 = vmatprep.mubr.f32.mxu1 %v1674_v23 }
  0xd2   : > { %1679 = vpow2.f32 %v378_v47  ;;  %v337_v30 = vmul.f32 %v309_v10, %v309_v10  ;;  %v361_v31 = vmul.f32 -12.004999, %v333_v6  ;;  %v398_v34 = vmul.f32 1.442695, %v356_v8  ;;  %943 = vmatmul.mubr.f32.vlgmr.msra.gmra.mrb[0].mxu1 %v1670_v7 }
  0xd3   : > { %1681 = vpow2.f32 %v384_v50  ;;  %v362_v35 = vmul.f32 -12.004999, %v334_v13  ;;  %v336_v51 = vmul.f32 %v308_v16, %v308_v16  ;;  %v360_v37 = vmul.f32 -12.004999, %v332_v17  ;;  %948 = vmatprep.mubr.f32.mxu1 %v1672_v14  ;;  %v864_v14 = vld [vmem:[%s1918_s25] sm:$0xff] }
  0xd4   : > { %1683 = vpow2.f32 %v376_v24  ;;  %v402_v38 = vmul.f32 1.442695, %v358_v18  ;;  %v338_v39 = vmul.f32 %v310_v22, %v310_v22  ;;  %v412_v41 = vmul.f32 1.442695, %v363_v53  ;;  %v865_v22 = vld [vmem:[%s1918_s25 + $0x8] sm:$0xff] }
  0xd5   : > { %1685 = vpow2.f32 %v392_v20  ;;  %v312_v42 = vsub.f32 %v2925_v25, %v284_v11  ;;  %v367_v43 = vmul.f32 -12.004999, %v339_v27  ;;  %v365_v59 = vmul.f32 -12.004999, %v337_v30 }
  0xd6   : > { %1687 = vpow2.f32 %v382_v60  ;;  %v408_v45 = vmul.f32 1.442695, %v361_v31  ;;  %v410_v47 = vmul.f32 1.442695, %v362_v35  ;;  %v406_v49 = vmul.f32 1.442695, %v360_v37 }
  0xd7   : > { %1689 = vpow2.f32 %v396_v0  ;;  %v366_v19 = vmul.f32 -12.004999, %v338_v39  ;;  %v364_v20 = vmul.f32 -12.004999, %v336_v51  ;;  %v340_v25 = vmul.f32 %v312_v42, %v312_v42  ;;  %v869_v42 = vld [vmem:[%s1918_s25 + $0x28] sm:$0xff] }
  0xd8   : > { %1691 = vpow2.f32 %v394_v12  ;;  %v420_v21 = vmul.f32 1.442695, %v367_v43  ;;  %v416_v24 = vmul.f32 1.442695, %v365_v59  ;;  %v369_v52 = vmul.f32 -12.004999, %v341_v46 }
  0xd9   : > { %1693 = vpow2.f32 %v404_v26  ;;  %v418_v55 = vmul.f32 1.442695, %v366_v19  ;;  %v414_v57 = vmul.f32 1.442695, %v364_v20  ;;  %v368_v58 = vmul.f32 -12.004999, %v340_v25 }
  0xda   : > { %v2958_v28 = vpop.eup %1675  ;;  %1695 = vpow2.f32 %v400_v29  ;;  %v424_v11 = vmul.f32 1.442695, %v369_v52  ;;  %v866_v29 = vld [vmem:[%s1918_s25 + $0x10] sm:$0xff] }
  0xdb   : > { %v1678_v33 = vpop.eup %1677  ;;  %1697 = vpow2.f32 %v398_v34  ;;  %v422_v62 = vmul.f32 1.442695, %v368_v58  ;;  %v873_v58 = vld [vmem:[%s1918_s25 + $0x48] sm:$0xff] }
  0xdc   : > { %v1680_v36 = vpop.eup %1679  ;;  %1699 = vpow2.f32 %v402_v38  ;;  %v868_v38 = vld [vmem:[%s1918_s25 + $0x20] sm:$0xff] }
  0xdd   : > { %v1682_v40 = vpop.eup %1681  ;;  %949 = vmatmul.mubr.f32.gmra.mrb[2].mxu1 %v1680_v36  ;;  %1701 = vpow2.f32 %v412_v41 }
  0xde   : > { %v1684_v44 = vpop.eup %1683  ;;  %954 = vmatprep.mubr.f32.mxu1 %v1668_v4  ;;  %1703 = vpow2.f32 %v408_v45 }
  0xdf   : > { %1049 = vmatprep.mubr.f32.mxu0 %v1684_v44  ;;  %v1686_v48 = vpop.eup %1685  ;;  %1705 = vpow2.f32 %v410_v47  ;;  %v870_v47 = vld [vmem:[%s1918_s25 + $0x30] sm:$0xff] }
  0xe0   : > { %1050 = vmatmul.mubr.f32.vlgmr.msra.gmra.mrb[0].mxu0 %v1678_v33  ;;  %v1688_v50 = vpop.eup %1687  ;;  %1707 = vpow2.f32 %v406_v49  ;;  %v867_v33 = vld [vmem:[%s1918_s25 + $0x18] sm:$0xff] }
  0xe1   : > { %1055 = vmatprep.mubr.f32.mxu0 %v1682_v40  ;;  %v1690_v54 = vpop.eup %1689  ;;  %955 = vmatmul.mubr.f32.gmra.mrb[4].mxu1 %v2952_v63  ;;  %1709 = vpow2.f32 %v420_v21 }
  0xe2   : > { %960 = vmatprep.mubr.f32.mxu1 %v1690_v54  ;;  %v1692_v56 = vpop.eup %1691  ;;  %1711 = vpow2.f32 %v416_v24  ;;  %v872_v54 = vld [vmem:[%s1918_s25 + $0x40] sm:$0xff] }
  0xe3   : > { %v1694_v9 = vpop.eup %1693  ;;  %1713 = vpow2.f32 %v418_v55 }
  0xe4   : > { %1056 = vmatmul.mubr.f32.gmra.mrb[2].mxu0 %v1688_v50  ;;  %v1696_v60 = vpop.eup %1695  ;;  %1715 = vpow2.f32 %v414_v57  ;;  %v871_v50 = vld [vmem:[%s1918_s25 + $0x38] sm:$0xff] }
  0xe5   : > { %1061 = vmatprep.mubr.f32.mxu0 %v1686_v48  ;;  %961 = vmatmul.mubr.f32.gmra.mrb[6].mxu1 %v1692_v56  ;;  %v1698_v61 = vpop.eup %1697  ;;  %1717 = vpow2.f32 %v424_v11 }
  0xe6   : > { %966 = vmatprep.mubr.f32.mxu1 %v1694_v9  ;;  %v1700_v15 = vpop.eup %1699  ;;  %1719 = vpow2.f32 %v422_v62 }
  0xe7   : > { %v1702_v63 = vpop.eup %1701 }
  0xe8   : > { %1062 = vmatmul.mubr.f32.gmra.mrb[4].mxu0 %v2958_v28  ;;  %v1704_v0 = vpop.eup %1703 }
  0xe9   : > { %1067 = vmatprep.mubr.f32.mxu0 %v1696_v60  ;;  %967 = vmatmul.mubr.f32.gmra.mrb[8].mxu1 %v1700_v15  ;;  %v1706_v1 = vpop.eup %1705  ;;  %v874_v15 = vld [vmem:[%s1918_s25 + $0x50] sm:$0xff] }
  0xea   : > { %972 = vmatprep.mubr.f32.mxu1 %v1702_v63  ;;  %v1708_v2 = vpop.eup %1707 }
  0xeb   : > { %v1710_v3 = vpop.eup %1709 }
  0xec   : > { %1068 = vmatmul.mubr.f32.gmra.mrb[6].mxu0 %v1698_v61  ;;  %v1712_v4 = vpop.eup %1711 }
  0xed   : > { %1073 = vmatprep.mubr.f32.mxu0 %v1704_v0  ;;  %973 = vmatmul.mubr.f32.gmra.mrb[10].mxu1 %v1706_v1  ;;  %v1714_v5 = vpop.eup %1713 }
  0xee   : > { %978 = vmatprep.mubr.f32.mxu1 %v1710_v3  ;;  %v1716_v10 = vpop.eup %1715 }
  0xef   : > { %v1718_v6 = vpop.eup %1717 }
  0xf0   : > { %1074 = vmatmul.mubr.f32.gmra.mrb[8].mxu0 %v1708_v2  ;;  %v1720_v7 = vpop.eup %1719  ;;  %v875_v2 = vld [vmem:[%s1918_s25 + $0x58] sm:$0xff] }
  0xf1   : > { %1079 = vmatprep.mubr.f32.mxu0 %v1712_v4  ;;  %979 = vmatmul.mubr.f32.gmra.mrb[12].mxu1 %v1714_v5 }
  0xf4   : > { %1080 = vmatmul.mubr.f32.gmra.mrb[10].mxu0 %v1716_v10 }
  0xf5   : > { %1085 = vmatprep.mubr.f32.mxu0 %v1718_v6  ;;  %v876_v6 = vld [vmem:[%s1918_s25 + $0x60] sm:$0xff] }
  0xf8   : > { %1086 = vmatmul.mubr.f32.gmra.mrb[12].mxu0 %v1720_v7 }
 0x1a5   : > { %v944_v8 = vpop.f32.mrb[0].mxu1 }
 0x1a6   : > { %v946_v12 = vpop.f32.mrb[1].mxu1 }
 0x1b0   : > { %v950_v13 = vpop.f32.mrb[2].mxu1 }
 0x1b1   : > { %v952_v17 = vpop.f32.mrb[3].mxu1 }
 0x1b3   : > { %v1051_v16 = vpop.f32.mrb[0].mxu0 }
 0x1b4   : > { %v1052_v18 = vadd.f32 %v1051_v16, %v944_v8  ;;  %v1053_v23 = vpop.f32.mrb[1].mxu0  ;;  %v956_v27 = vpop.f32.mrb[4].mxu1 }
 0x1b5   : > { %v1054_v53 = vadd.f32 %v1053_v23, %v946_v12  ;;  %v958_v31 = vpop.f32.mrb[5].mxu1  ;;  %v877_v12 = vld [vmem:[%s1918_s25 + $0x68] sm:$0xff] }
 0x1b6   : > { %v1092_v26 = vadd.f32 %v1052_v18, %v864_v14 }
 0x1b7   : > { %v1093_v28 = vadd.f32 %v1054_v53, %v865_v22  ;;  %v1057_v30 = vpop.f32.mrb[2].mxu0 }
 0x1b8   : > { %1106 = vst [vmem:[%s1918_s25] sm:$0xff] %v1092_v26  ;;  %v1058_v32 = vadd.f32 %v1057_v30, %v950_v13  ;;  %v1059_v34 = vpop.f32.mrb[3].mxu0  ;;  %v962_v51 = vpop.f32.mrb[6].mxu1 }
 0x1b9   : > { %1107 = vst [vmem:[%s1918_s25 + $0x8] sm:$0xff] %v1093_v28  ;;  %v1060_v35 = vadd.f32 %v1059_v34, %v952_v17  ;;  %v964_v40 = vpop.f32.mrb[7].mxu1 }
 0x1ba   : > { %v1094_v36 = vadd.f32 %v1058_v32, %v866_v29 }
 0x1bb   : > { %v1095_v37 = vadd.f32 %v1060_v35, %v867_v33  ;;  %v1063_v39 = vpop.f32.mrb[4].mxu0 }
 0x1bc   : > { %1108 = vst [vmem:[%s1918_s25 + $0x10] sm:$0xff] %v1094_v36  ;;  %v1064_v41 = vadd.f32 %v1063_v39, %v956_v27  ;;  %v1065_v43 = vpop.f32.mrb[5].mxu0  ;;  %v968_v45 = vpop.f32.mrb[8].mxu1 }
 0x1bd   : > { %1109 = vst [vmem:[%s1918_s25 + $0x18] sm:$0xff] %v1095_v37  ;;  %v1066_v44 = vadd.f32 %v1065_v43, %v958_v31  ;;  %v970_v49 = vpop.f32.mrb[9].mxu1 }
 0x1be   : > { %v1096_v59 = vadd.f32 %v1064_v41, %v868_v38 }
 0x1bf   : > { %v1097_v46 = vadd.f32 %v1066_v44, %v869_v42  ;;  %v1069_v48 = vpop.f32.mrb[6].mxu0 }
 0x1c0   : > { %1110 = vst [vmem:[%s1918_s25 + $0x20] sm:$0xff] %v1096_v59  ;;  %v1070_v19 = vadd.f32 %v1069_v48, %v962_v51  ;;  %v1071_v20 = vpop.f32.mrb[7].mxu0  ;;  %v974_v24 = vpop.f32.mrb[10].mxu1 }
 0x1c1   : > { %1111 = vst [vmem:[%s1918_s25 + $0x28] sm:$0xff] %v1097_v46  ;;  %v1072_v25 = vadd.f32 %v1071_v20, %v964_v40  ;;  %v976_v56 = vpop.f32.mrb[11].mxu1 }
 0x1c2   : > { %v1098_v21 = vadd.f32 %v1070_v19, %v870_v47 }
 0x1c3   : > { %v1099_v52 = vadd.f32 %v1072_v25, %v871_v50  ;;  %v1075_v55 = vpop.f32.mrb[8].mxu0 }
 0x1c4   : > { %1112 = vst [vmem:[%s1918_s25 + $0x30] sm:$0xff] %v1098_v21  ;;  %v1076_v57 = vadd.f32 %v1075_v55, %v968_v45  ;;  %v1077_v11 = vpop.f32.mrb[9].mxu0  ;;  %v980_v61 = vpop.f32.mrb[12].mxu1 }
 0x1c5   : > { %1113 = vst [vmem:[%s1918_s25 + $0x38] sm:$0xff] %v1099_v52  ;;  %v1078_v9 = vadd.f32 %v1077_v11, %v970_v49  ;;  %v982_v0 = vpop.f32.mrb[13].mxu1 }
 0x1c6   : > { %v1100_v60 = vadd.f32 %v1076_v57, %v872_v54 }
 0x1c7   : > { %v1101_v62 = vadd.f32 %v1078_v9, %v873_v58  ;;  %v1081_v63 = vpop.f32.mrb[10].mxu0 }
 0x1c8   : > { %1114 = vst [vmem:[%s1918_s25 + $0x40] sm:$0xff] %v1100_v60  ;;  %v1082_v1 = vadd.f32 %v1081_v63, %v974_v24  ;;  %v1083_v3 = vpop.f32.mrb[11].mxu0 }
 0x1c9   : > { %1115 = vst [vmem:[%s1918_s25 + $0x48] sm:$0xff] %v1101_v62  ;;  %v1084_v4 = vadd.f32 %v1083_v3, %v976_v56 }
 0x1ca   : > { %v1102_v5 = vadd.f32 %v1082_v1, %v874_v15 }
 0x1cb   : > { %v1103_v10 = vadd.f32 %v1084_v4, %v875_v2  ;;  %v1087_v7 = vpop.f32.mrb[12].mxu0 }
 0x1cc   : > { %1116 = vst [vmem:[%s1918_s25 + $0x50] sm:$0xff] %v1102_v5  ;;  %v1088_v8 = vadd.f32 %v1087_v7, %v980_v61  ;;  %v1089_v13 = vpop.f32.mrb[13].mxu0 }
 0x1cd   : > { %1117 = vst [vmem:[%s1918_s25 + $0x58] sm:$0xff] %v1103_v10  ;;  %v1090_v14 = vadd.f32 %v1089_v13, %v982_v0 }
 0x1ce   : > { %v1104_v16 = vadd.f32 %v1088_v8, %v876_v6 }
 0x1cf   : > { %v1105_v17 = vadd.f32 %v1090_v14, %v877_v12 }
 0x1d0   : > { %1118 = vst [vmem:[%s1918_s25 + $0x60] sm:$0xff] %v1104_v16 }
 0x1d1   : > { %1119 = vst [vmem:[%s1918_s25 + $0x68] sm:$0xff] %v1105_v17 }
 0x1d2   : > { %1758 = shalt.err (!%p1755_p1)
}
 0x1d3   : > { %s1759_s15 = scalar_lea.hbm %s3002_s19, 1792  ;;  %s1763_s21 = scalar_lea.hbm %s3055_s5, 1792 }
 0x1d4   : > { %p1760_p3 = scmp.ne.s32.totalorder %s3002_s19, %s1759_s15  ;;  %p1764_p6 = scmp.lt.u32.totalorder %s3002_s19, %s3055_s5 }
 0x1d5   : > { %p1765_p7 = scmp.lt.u32.totalorder %s1763_s21, %s1759_s15  ;;  %p1767_p9 = scmp.lt.u32.totalorder %s1759_s15, %s3002_s19 }
 0x1d6   : > { %p1761_p4 = pnand %p1760_p3, %p1889_p0 }
 0x1d7   : > { %p1766_p8 = por %p1765_p7, %p1764_p6 }
 0x1d8   : > { %p1762_p5 = pneg %p1761_p4 }
 0x1d9   : > { %p1768_p10 = por %p1767_p9, %p1766_p8 }
 0x1db   : > { %p1769_p11 = pnand %p1768_p10, %p1762_p5 }
 0x1dd   : > { %1772 = shalt.err (!%p1769_p11)
}
 0x1de   : > { %s1817_s12 = smov 256   ;;  %s1818_s16 = smov 16  }
 0x1df   : > { %1617 = dma.vmem_to_hbm [thread:$0]  (%p1889_p0), %s3004_s13, 1792, %s3002_s19, %s3010_s20, %s1817_s12, %s1817_s12, %s1818_s16  }
 0x1e0 PF: > { %p1623_p12 = scmp.ge.s32.totalorder %s1809_s29, 2  ;;  %s1150_s24 = sand.u32 1, %s1797_s1  }
 0x1e1   : > { %s1151_s30 = scalar_lea.sflag [#allocation6], %s1150_s24 }
 0x1e2   : > { %p1620_p13 = pnand %p1623_p12, %p1894_p2 }
 0x1e4   : > { %1792 = dma.done.wait (!%p1620_p13), %s1151_s30, 1792  }
 0x1e5   : > { %1794 = vsyncadd (!%p1620_p13), %s1151_s30, 4294965504  ;;  %p25_p1 = scmp.ge.s32.totalorder %s1880_s7, 4   ;;  %s3261_s1 = smov %s1801_s27 }
 0x1e6   : > { %s3262_s27 = smov %s1805_s28  ;;  %s3263_s28 = smov %s1901_s14 }
 0x1e7   : > { %s3264_s29 = smov %s1880_s7  ;;  %27 = sbr.rel (!%p25_p1) target bundleno = 28 (0x1c), region = 74 }
 0x1ee   :  { %1156 = vsyncpa [#allocation6], 1 }
 0x1ef   :  { %1158 = vsyncpa [#allocation6 + $0x1], 1 }

</bundles_post_ra>
